<compile_context>
chip_gen: v6e
topology: v6e:2x2x1
jax: 0.10.0
libtpu: 0.0.40
codegen_flags: <defaults>
</compile_context>

<pallas_src>
import functools

import jax
import jax.numpy as jnp
from jax.experimental import pallas as pl
from jax.experimental.pallas import tpu as pltpu


def _round_up(x, m):
    return ((x + m - 1) // m) * m


def _adapter_kernel(x_ref, gamma_ref, beta_ref,
                    wd_ref, bd_ref, wu_ref, bu_ref, o_ref,
                    *, scale, eps, matmul_dtype):
    # Load the row-tile ONCE; it serves both the LayerNorm input and the residual.
    x = x_ref[...].astype(jnp.float32)                          # (TR, D)

    # LayerNorm over the feature dim (nn.LayerNorm(n_embd), eps=1e-5). f32 VPU math.
    mean = jnp.mean(x, axis=-1, keepdims=True)
    cent = x - mean
    var = jnp.mean(cent * cent, axis=-1, keepdims=True)
    xn = cent * jax.lax.rsqrt(var + eps)
    xn = xn * gamma_ref[...] + beta_ref[...]                    # (TR, D)

    # down_proj + ReLU   (dropout p=0.0 / eval mode -> identity).
    # Weights are already stored in matmul_dtype; cast only the activations.
    down = jnp.dot(xn.astype(matmul_dtype), wd_ref[...],
                   preferred_element_type=jnp.float32) + bd_ref[...]
    down = jnp.maximum(down, 0.0)                               # (TR, Bp)

    # up_proj, then * scale, then residual add (scale multiplies bias too,
    # matching PyTorch: up = up_proj(down); up = up * scale; out = up + residual).
    up = jnp.dot(down.astype(matmul_dtype), wu_ref[...],
                 preferred_element_type=jnp.float32) + bu_ref[...]
    out = up * scale + x                                        # residual reuse
    o_ref[...] = out.astype(o_ref.dtype)


def prepare_adapter_params(params, *, matmul_dtype=jnp.float32):
    """One-time init: pad the bottleneck to a multiple of 128 lanes (full-lane
    matmuls, extra columns/rows are zero so ReLU(0)=0 contributes nothing),
    pre-cast the weights to the matmul dtype and reshape biases / LN params.
    Do NOT call this per forward step."""
    D, bott = params["w_down"].shape
    bott_p = _round_up(bott, 128)
    wd = jnp.zeros((D, bott_p), matmul_dtype).at[:, :bott].set(
        params["w_down"].astype(matmul_dtype))
    wu = jnp.zeros((bott_p, D), matmul_dtype).at[:bott, :].set(
        params["w_up"].astype(matmul_dtype))
    bd = jnp.zeros((1, bott_p), jnp.float32).at[:, :bott].set(
        params["b_down"].astype(jnp.float32))
    bu = params["b_up"].reshape(1, D).astype(jnp.float32)
    gamma = params["gamma"].reshape(1, D).astype(jnp.float32)
    beta = params["beta"].reshape(1, D).astype(jnp.float32)
    return {"gamma": gamma, "beta": beta,
            "w_down": wd, "b_down": bd, "w_up": wu, "b_up": bu}


def adapter_forward(x, prep, *, scale=1.0, eps=1e-5, row_tile=512):
    """x: (B, S, D) in f32 or bf16 (bf16 recommended: kernel is HBM-bound).
    prep: output of prepare_adapter_params (pre-padded / pre-cast weights)."""
    B, S, D = x.shape
    bott_p = prep["w_down"].shape[1]
    matmul_dtype = prep["w_down"].dtype
    N = B * S
    x2 = x.reshape(N, D)

    # --- row tiling ----------------------------------------------------------
    # Multiple of 16 (bf16 packs 16 rows / vreg); ragged last block handled by
    # Pallas, so no jnp.pad / output slice copies.
    tile = min(int(row_tile), _round_up(N, 16))
    tile = _round_up(tile, 16)
    if N >= 32:
        # Guarantee >= 2 grid steps so the 'parallel' axis spans both v7x TCs.
        tile = min(tile, _round_up(pl.cdiv(N, 2), 16))
    grid = (pl.cdiv(N, tile),)

    kernel = functools.partial(_adapter_kernel, scale=float(scale),
                               eps=float(eps), matmul_dtype=matmul_dtype)

    itemsize_x = jnp.dtype(x.dtype).itemsize
    itemsize_mm = jnp.dtype(matmul_dtype).itemsize
    w_bytes = 2 * D * bott_p * itemsize_mm

    # --- VMEM budget: real footprint, capped below v7x's 64 MiB physical -----
    io_buf = 4 * tile * D * itemsize_x            # x + out, double-buffered
    interm = 3 * tile * D * 4 + 2 * tile * bott_p * 4   # f32 temporaries
    small = (3 * D + bott_p) * 4
    footprint = io_buf + w_bytes + interm + small
    vmem_limit = int(min(48 << 20, max(32 << 20, footprint * 3 // 2)))

    cost = pl.CostEstimate(
        flops=4 * N * D * bott_p,                 # two matmuls (2*M*K*N each)
        transcendentals=N,                        # one rsqrt per row
        bytes_accessed=2 * N * D * itemsize_x + w_bytes,  # x read once + out write
    )

    const = pl.Buffered(1)   # single-buffer the grid-invariant operands

    out2 = pl.pallas_call(
        kernel,
        out_shape=jax.ShapeDtypeStruct((N, D), x.dtype),
        grid_spec=pltpu.PrefetchScalarGridSpec(
            num_scalar_prefetch=0,
            grid=grid,
            in_specs=[
                pl.BlockSpec((tile, D), lambda i: (i, 0)),       # x (LN input + residual)
                pl.BlockSpec((1, D), lambda i: (0, 0), pipeline_mode=const),      # gamma
                pl.BlockSpec((1, D), lambda i: (0, 0), pipeline_mode=const),      # beta
                pl.BlockSpec((D, bott_p), lambda i: (0, 0), pipeline_mode=const), # W_down
                pl.BlockSpec((1, bott_p), lambda i: (0, 0), pipeline_mode=const), # b_down
                pl.BlockSpec((bott_p, D), lambda i: (0, 0), pipeline_mode=const), # W_up
                pl.BlockSpec((1, D), lambda i: (0, 0), pipeline_mode=const),      # b_up
            ],
            out_specs=pl.BlockSpec((tile, D), lambda i: (i, 0)),
        ),
        compiler_params=pltpu.CompilerParams(
            dimension_semantics=("parallel",),    # shards rows across v7x's 2 TCs
            vmem_limit_bytes=vmem_limit),
        cost_estimate=cost,
    )(x2, prep["gamma"], prep["beta"],
      prep["w_down"], prep["b_down"], prep["w_up"], prep["b_up"])

    return out2.reshape(B, S, D)


def reference_forward(x, params, *, scale=1.0, eps=1e-5):
    """Pure-JAX reference of the PyTorch Adapter.forward (eval mode, add_residual)."""
    residual = x
    mean = jnp.mean(x, axis=-1, keepdims=True)
    var = jnp.mean((x - mean) ** 2, axis=-1, keepdims=True)
    xn = (x - mean) / jnp.sqrt(var + eps) * params["gamma"] + params["beta"]
    down = jnp.maximum(xn @ params["w_down"] + params["b_down"], 0.0)
    up = (down @ params["w_up"] + params["b_up"]) * scale
    return up + residual


if __name__ == "__main__":
    # Small shapes: batch=2, seq=8, d_model=32, bottleneck=16.
    B, S, D, BOTT = 2, 8, 32, 16

    key = jax.random.PRNGKey(0)
    kx, kg, kb, kwd, kbd, kwu, kbu = jax.random.split(key, 7)

    x = jax.random.normal(kx, (B, S, D), dtype=jnp.float32)

    # Deterministic synthetic parameter init.
    # NOTE: the module's 'lora' init zeros up_proj (output would equal residual);
    # nonzero random values are used so the kernel compute is actually exercised.
    params = {
        "gamma": 1.0 + 0.1 * jax.random.normal(kg, (D,), dtype=jnp.float32),
        "beta": 0.1 * jax.random.normal(kb, (D,), dtype=jnp.float32),
        "w_down": 0.1 * jax.random.normal(kwd, (D, BOTT), dtype=jnp.float32),
        "b_down": 0.1 * jax.random.normal(kbd, (BOTT,), dtype=jnp.float32),
        "w_up": 0.1 * jax.random.normal(kwu, (BOTT, D), dtype=jnp.float32),
        "b_up": 0.1 * jax.random.normal(kbu, (D,), dtype=jnp.float32),
    }

    # TODO(synk): dropout with p>0 in training mode is not implemented
    # (default dropout=0.0 / eval mode -> identity, which is what we reproduce).

    # --- f32 I/O + f32 matmul path (exact vs reference) ----------------------
    prep_f32 = prepare_adapter_params(params, matmul_dtype=jnp.float32)
    ref = reference_forward(x, params, scale=1.0)
    out = adapter_forward(x, prep_f32, scale=1.0)
    out = jax.block_until_ready(out)
    assert out.shape == (B, S, D)
    assert jnp.allclose(out, ref, atol=1e-4, rtol=1e-4), "f32 path mismatch vs reference"

    # --- bf16 I/O + bf16 matmul path (recommended: kernel is HBM-bound) ------
    prep_bf16 = prepare_adapter_params(params, matmul_dtype=jnp.bfloat16)
    x_bf16 = x.astype(jnp.bfloat16)
    ref_bf = reference_forward(x_bf16.astype(jnp.float32), params, scale=1.0)
    out_bf16 = adapter_forward(x_bf16, prep_bf16, scale=1.0)
    out_bf16 = jax.block_until_ready(out_bf16)
    assert out_bf16.dtype == jnp.bfloat16
    assert jnp.allclose(out_bf16.astype(jnp.float32), ref_bf, atol=5e-2, rtol=5e-2), \
        "bf16 path mismatch vs reference"

    print("KERNEL_OK")
</pallas_src>

<mosaic_0001>
module attributes {stable_mosaic.version = 11 : i64} {
  func.func @_adapter_kernel(%arg0: i32, %arg1: memref<16x32xf32, #tpu.memory_space<vmem>>, %arg2: memref<1x32xf32, #tpu.memory_space<vmem>>, %arg3: memref<1x32xf32, #tpu.memory_space<vmem>>, %arg4: memref<32x128xf32, #tpu.memory_space<vmem>>, %arg5: memref<1x128xf32, #tpu.memory_space<vmem>>, %arg6: memref<128x32xf32, #tpu.memory_space<vmem>>, %arg7: memref<1x32xf32, #tpu.memory_space<vmem>>, %arg8: memref<16x32xf32, #tpu.memory_space<vmem>>) attributes {dimension_semantics = [#tpu.dimension_semantics<parallel>], iteration_bounds = array<i64: 1>, scalar_prefetch = 0 : i64, scratch_operands = 0 : i64, tpu.core_type = #tpu.core_type<tc>, window_params = [{transform_indices = @transform_0, window_bounds = array<i64: 16, 32>}, {pipeline_mode = #tpu.pipeline_mode<synchronous>, transform_indices = @transform_1, window_bounds = array<i64: 1, 32>}, {pipeline_mode = #tpu.pipeline_mode<synchronous>, transform_indices = @transform_2, window_bounds = array<i64: 1, 32>}, {pipeline_mode = #tpu.pipeline_mode<synchronous>, transform_indices = @transform_3, window_bounds = array<i64: 32, 128>}, {pipeline_mode = #tpu.pipeline_mode<synchronous>, transform_indices = @transform_4, window_bounds = array<i64: 1, 128>}, {pipeline_mode = #tpu.pipeline_mode<synchronous>, transform_indices = @transform_5, window_bounds = array<i64: 128, 32>}, {pipeline_mode = #tpu.pipeline_mode<synchronous>, transform_indices = @transform_6, window_bounds = array<i64: 1, 32>}, {transform_indices = @transform_7, window_bounds = array<i64: 16, 32>}]} {
    %c0 = arith.constant 0 : index
    %c0_0 = arith.constant 0 : index
    %0 = vector.load %arg1[%c0, %c0_0] : memref<16x32xf32, #tpu.memory_space<vmem>>, vector<16x32xf32>
    %cst = arith.constant dense<0.000000e+00> : vector<16xf32>
    %1 = vector.multi_reduction <add>, %0, %cst [1] : vector<16x32xf32> to vector<16xf32>
    %2 = vector.shape_cast %1 : vector<16xf32> to vector<16x1xf32>
    %cst_1 = arith.constant 3.200000e+01 : f32
    %3 = vector.broadcast %cst_1 : f32 to vector<16x1xf32>
    %4 = arith.divf %2, %3 : vector<16x1xf32>
    %5 = vector.broadcast %4 : vector<16x1xf32> to vector<16x32xf32>
    %6 = arith.subf %0, %5 : vector<16x32xf32>
    %7 = arith.mulf %6, %6 : vector<16x32xf32>
    %cst_2 = arith.constant dense<0.000000e+00> : vector<16xf32>
    %8 = vector.multi_reduction <add>, %7, %cst_2 [1] : vector<16x32xf32> to vector<16xf32>
    %9 = vector.shape_cast %8 : vector<16xf32> to vector<16x1xf32>
    %cst_3 = arith.constant 3.200000e+01 : f32
    %10 = vector.broadcast %cst_3 : f32 to vector<16x1xf32>
    %11 = arith.divf %9, %10 : vector<16x1xf32>
    %cst_4 = arith.constant 9.99999974E-6 : f32
    %12 = vector.broadcast %cst_4 : f32 to vector<16x1xf32>
    %13 = arith.addf %11, %12 : vector<16x1xf32>
    %14 = math.rsqrt %13 : vector<16x1xf32>
    %15 = vector.broadcast %14 : vector<16x1xf32> to vector<16x32xf32>
    %16 = arith.mulf %6, %15 : vector<16x32xf32>
    %c0_5 = arith.constant 0 : index
    %c0_6 = arith.constant 0 : index
    %17 = vector.load %arg2[%c0_5, %c0_6] : memref<1x32xf32, #tpu.memory_space<vmem>>, vector<1x32xf32>
    %18 = vector.broadcast %17 : vector<1x32xf32> to vector<16x32xf32>
    %19 = arith.mulf %16, %18 : vector<16x32xf32>
    %c0_7 = arith.constant 0 : index
    %c0_8 = arith.constant 0 : index
    %20 = vector.load %arg3[%c0_7, %c0_8] : memref<1x32xf32, #tpu.memory_space<vmem>>, vector<1x32xf32>
    %21 = vector.broadcast %20 : vector<1x32xf32> to vector<16x32xf32>
    %22 = arith.addf %19, %21 : vector<16x32xf32>
    %c0_9 = arith.constant 0 : index
    %c0_10 = arith.constant 0 : index
    %23 = vector.load %arg4[%c0_9, %c0_10] : memref<32x128xf32, #tpu.memory_space<vmem>>, vector<32x128xf32>
    %cst_11 = arith.constant dense<0.000000e+00> : vector<16x128xf32>
    %24 = tpu.matmul %22, %23, %cst_11 {dimension_numbers = #tpu.dot_dimension_numbers<[1], [0], [0], [1], [0, 0, 1, 1], [], []>} : vector<16x32xf32>, vector<32x128xf32>, vector<16x128xf32> -> vector<16x128xf32>
    %c0_12 = arith.constant 0 : index
    %c0_13 = arith.constant 0 : index
    %25 = vector.load %arg5[%c0_12, %c0_13] : memref<1x128xf32, #tpu.memory_space<vmem>>, vector<1x128xf32>
    %26 = vector.broadcast %25 : vector<1x128xf32> to vector<16x128xf32>
    %27 = arith.addf %24, %26 : vector<16x128xf32>
    %cst_14 = arith.constant 0.000000e+00 : f32
    %28 = vector.broadcast %cst_14 : f32 to vector<16x128xf32>
    %29 = arith.maximumf %27, %28 : vector<16x128xf32>
    %c0_15 = arith.constant 0 : index
    %c0_16 = arith.constant 0 : index
    %30 = vector.load %arg6[%c0_15, %c0_16] : memref<128x32xf32, #tpu.memory_space<vmem>>, vector<128x32xf32>
    %cst_17 = arith.constant dense<0.000000e+00> : vector<16x32xf32>
    %31 = tpu.matmul %29, %30, %cst_17 {dimension_numbers = #tpu.dot_dimension_numbers<[1], [0], [0], [1], [0, 0, 1, 1], [], []>} : vector<16x128xf32>, vector<128x32xf32>, vector<16x32xf32> -> vector<16x32xf32>
    %c0_18 = arith.constant 0 : index
    %c0_19 = arith.constant 0 : index
    %32 = vector.load %arg7[%c0_18, %c0_19] : memref<1x32xf32, #tpu.memory_space<vmem>>, vector<1x32xf32>
    %33 = vector.broadcast %32 : vector<1x32xf32> to vector<16x32xf32>
    %34 = arith.addf %31, %33 : vector<16x32xf32>
    %cst_20 = arith.constant 1.000000e+00 : f32
    %35 = vector.broadcast %cst_20 : f32 to vector<16x32xf32>
    %36 = arith.mulf %34, %35 : vector<16x32xf32>
    %37 = arith.addf %36, %0 : vector<16x32xf32>
    %c0_21 = arith.constant 0 : index
    %c0_22 = arith.constant 0 : index
    %38 = vector.load %arg8[%c0_21, %c0_22] : memref<16x32xf32, #tpu.memory_space<vmem>>, vector<16x32xf32>
    tpu.vector_store %arg8[%c0_21, %c0_22], %37 {strides = array<i32>} : memref<16x32xf32, #tpu.memory_space<vmem>>, vector<16x32xf32>,
    return
  }
  func.func @transform_0(%arg0: i32) -> (i32, i32) {
    %c0_i32 = arith.constant 0 : i32
    %c0_i32_0 = arith.constant 0 : i32
    return %arg0, %c0_i32 : i32, i32
  }
  func.func @transform_1(%arg0: i32) -> (i32, i32) {
    %c0_i32 = arith.constant 0 : i32
    %c0_i32_0 = arith.constant 0 : i32
    %c0_i32_1 = arith.constant 0 : i32
    return %c0_i32, %c0_i32_0 : i32, i32
  }
  func.func @transform_2(%arg0: i32) -> (i32, i32) {
    %c0_i32 = arith.constant 0 : i32
    %c0_i32_0 = arith.constant 0 : i32
    %c0_i32_1 = arith.constant 0 : i32
    return %c0_i32, %c0_i32_0 : i32, i32
  }
  func.func @transform_3(%arg0: i32) -> (i32, i32) {
    %c0_i32 = arith.constant 0 : i32
    %c0_i32_0 = arith.constant 0 : i32
    %c0_i32_1 = arith.constant 0 : i32
    return %c0_i32, %c0_i32_0 : i32, i32
  }
  func.func @transform_4(%arg0: i32) -> (i32, i32) {
    %c0_i32 = arith.constant 0 : i32
    %c0_i32_0 = arith.constant 0 : i32
    %c0_i32_1 = arith.constant 0 : i32
    return %c0_i32, %c0_i32_0 : i32, i32
  }
  func.func @transform_5(%arg0: i32) -> (i32, i32) {
    %c0_i32 = arith.constant 0 : i32
    %c0_i32_0 = arith.constant 0 : i32
    %c0_i32_1 = arith.constant 0 : i32
    return %c0_i32, %c0_i32_0 : i32, i32
  }
  func.func @transform_6(%arg0: i32) -> (i32, i32) {
    %c0_i32 = arith.constant 0 : i32
    %c0_i32_0 = arith.constant 0 : i32
    %c0_i32_1 = arith.constant 0 : i32
    return %c0_i32, %c0_i32_0 : i32, i32
  }
  func.func @transform_7(%arg0: i32) -> (i32, i32) {
    %c0_i32 = arith.constant 0 : i32
    %c0_i32_0 = arith.constant 0 : i32
    return %arg0, %c0_i32 : i32, i32
  }
}

</mosaic_0001>

<bundles_post_ra>
// kernel: tpu_custom_call.1
= control target key start
LH: loop header
LB: loop body
LE: loop exit
PB: predicated region body
PF: predicated region fallthrough
CT: control target
= control target key end

     0   :  { %vm29_vm0 = vcmask 261120   ;;  %s544_s0 = inlined_call_operand.vmem [shape: f32[16,32], index: 0, kind: input, shape index: {}]   ;;  %s545_s1 = inlined_call_operand.vmem [shape: f32[1,32], index: 1, kind: input, shape index: {}]   ;;  %s546_s2 = inlined_call_operand.vmem [shape: f32[1,32], index: 2, kind: input, shape index: {}]   ;;  %s547_s3 = inlined_call_operand.vmem [shape: f32[32,128], index: 3, kind: input, shape index: {}]   ;;  %s548_s4 = inlined_call_operand.vmem [shape: f32[1,128], index: 4, kind: input, shape index: {}]   ;;  %s549_s5 = inlined_call_operand.vmem [shape: f32[128,32], index: 5, kind: input, shape index: {}]   ;;  %s550_s6 = inlined_call_operand.vmem [shape: f32[1,32], index: 6, kind: input, shape index: {}]   ;;  %s551_s7 = inlined_call_operand.hbm [shape: f32[16,32], index: 7, kind: output, shape index: {}]  }
   0x1   :  { %v438_v0 = vld [vmem:[%s544_s0] sm:$0xff]  ;;  %v443_v1 = vld [vmem:[%s544_s0 + $0x8] sm:$0xff] }
   0x2   :  { %12 = vsyncpa [#allocation3], 0  ;;  %v30_v2 = vsel %vm29_vm0, %v438_v0, 0.0  ;;  %v33_v3 = vsel %vm29_vm0, %v443_v1, 0.0  ;;  %v78_v14 = vld [vmem:[%s547_s3 + $0x18] sm:$0xff]  ;;  %v77_v15 = vld [vmem:[%s547_s3 + $0x10] sm:$0xff] }
   0x3   :  { %31 = vadd.xlane.f32.xlu0 %v30_v2  ;;  %317 = vmatprep.subr.mxu0 %v78_v14  ;;  %v76_v16 = vld [vmem:[%s547_s3 + $0x8] sm:$0xff]  ;;  %v75_v17 = vld [vmem:[%s547_s3] sm:$0xff]  ;;  %v184_v18 = vld [vmem:[%s549_s5 + $0x78] sm:$0xff] }
   0x4   :  { %318 = vmatpush3.msra.mxu0 %v78_v14  ;;  %v183_v19 = vld [vmem:[%s549_s5 + $0x70] sm:$0xff]  ;;  %328 = vmatprep.subr.mxu1 %v184_v18  ;;  %v182_v20 = vld [vmem:[%s549_s5 + $0x68] sm:$0xff]  ;;  %v181_v21 = vld [vmem:[%s549_s5 + $0x60] sm:$0xff] }
   0x5   :  { %319 = vmatprep.subr.mxu0 %v77_v15  ;;  %329 = vmatpush3.msra.mxu1 %v184_v18  ;;  %v180_v22 = vld [vmem:[%s549_s5 + $0x58] sm:$0xff]  ;;  %v179_v23 = vld [vmem:[%s549_s5 + $0x50] sm:$0xff]  ;;  %v178_v24 = vld [vmem:[%s549_s5 + $0x48] sm:$0xff] }
   0x6   :  { %320 = vmatpush3.msra.mxu0 %v77_v15  ;;  %330 = vmatprep.subr.mxu1 %v183_v19  ;;  %v177_v25 = vld [vmem:[%s549_s5 + $0x40] sm:$0xff]  ;;  %v176_v26 = vld [vmem:[%s549_s5 + $0x38] sm:$0xff]  ;;  %v175_v27 = vld [vmem:[%s549_s5 + $0x30] sm:$0xff] }
   0x7   :  { %34 = vadd.xlane.f32.xlu0 %v33_v3  ;;  %321 = vmatprep.subr.mxu0 %v76_v16  ;;  %v174_v28 = vld [vmem:[%s549_s5 + $0x28] sm:$0xff]  ;;  %v173_v29 = vld [vmem:[%s549_s5 + $0x20] sm:$0xff]  ;;  %v172_v46 = vld [vmem:[%s549_s5 + $0x18] sm:$0xff] }
   0x8   :  { %322 = vmatpush3.msra.mxu0 %v76_v16  ;;  %331 = vmatpush3.msra.mxu1 %v183_v19  ;;  %v287_v37 = vld [vmem:[%s545_s1] ss:$0 sm:$0xff]  ;;  %v171_v47 = vld [vmem:[%s549_s5 + $0x10] sm:$0xff]  ;;  %v170_v48 = vld [vmem:[%s549_s5 + $0x8] sm:$0xff] }
   0x9   :  { %323 = vmatprep.subr.mxu0 %v75_v17  ;;  %332 = vmatprep.subr.mxu1 %v182_v20  ;;  %v288_v39 = vld [vmem:[%s546_s2] ss:$0 sm:$0xff] }
   0xa   :  { %324 = vmatpush3.msra.mxu0 %v75_v17  ;;  %333 = vmatpush3.msra.mxu1 %v182_v20  ;;  %v169_v49 = vld [vmem:[%s549_s5] sm:$0xff]  ;;  %s392_s5 = smov [#allocation2]  }
   0xb   :  { %334 = vmatprep.subr.mxu1 %v181_v21  ;;  %v289_v50 = vld [vmem:[%s548_s4] ss:$0 sm:$0xff]  ;;  %s276_s24 = sshll.u32 %s392_s5, 4  ;;  %s277_s24 = int_to_ptr.vmem [resolvable:$true] %s276_s24 }
   0xc   :  { %335 = vmatpush3.msra.mxu1 %v181_v21  ;;  %v292_v57 = vld [vmem:[%s550_s6] ss:$0 sm:$0xff]  ;;  %s370_s4 = scalar_lea.vmem %s277_s24, 256  ;;  %p375_p1 = scmp.lt.s32.totalorder %s277_s24, %s277_s24 }
   0xd   :  { %336 = vmatprep.subr.mxu1 %v180_v22  ;;  %p371_p0 = scmp.ne.s32.totalorder %s277_s24, %s370_s4  ;;  %p376_p2 = scmp.lt.s32.totalorder %s370_s4, %s370_s4 }
   0xe   :  { %337 = vmatpush3.msra.mxu1 %v180_v22 }
   0xf   :  { %338 = vmatprep.subr.mxu1 %v179_v23  ;;  %p377_p3 = por %p376_p2, %p375_p1 }
  0x10   :  { %339 = vmatpush3.msra.mxu1 %v179_v23 }
  0x11   :  { %340 = vmatprep.subr.mxu1 %v178_v24  ;;  %p378_p4 = pnand %p377_p3, %p371_p0 }
  0x12   :  { %341 = vmatpush3.msra.mxu1 %v178_v24 }
  0x13   :  { %342 = vmatprep.subr.mxu1 %v177_v25 }
  0x14   :  { %343 = vmatpush3.msra.mxu1 %v177_v25 }
  0x15   :  { %344 = vmatprep.subr.mxu1 %v176_v26 }
  0x16   :  { %345 = vmatpush3.msra.mxu1 %v176_v26 }
  0x17   :  { %346 = vmatprep.subr.mxu1 %v175_v27 }
  0x18   :  { %347 = vmatpush3.msra.mxu1 %v175_v27 }
  0x19   :  { %348 = vmatprep.subr.mxu1 %v174_v28 }
  0x1a   :  { %349 = vmatpush3.msra.mxu1 %v174_v28 }
  0x1b   :  { %350 = vmatprep.subr.mxu1 %v173_v29 }
  0x1c   :  { %351 = vmatpush3.msra.mxu1 %v173_v29 }
  0x1d   :  { %352 = vmatprep.subr.mxu1 %v172_v46 }
  0x1e   :  { %353 = vmatpush3.msra.mxu1 %v172_v46 }
  0x1f   :  { %354 = vmatprep.subr.mxu1 %v171_v47 }
  0x20   :  { %355 = vmatpush3.msra.mxu1 %v171_v47 }
  0x21   :  { %356 = vmatprep.subr.mxu1 %v170_v48 }
  0x22   :  { %357 = vmatpush3.msra.mxu1 %v170_v48 }
  0x23   :  { %358 = vmatprep.subr.mxu1 %v169_v49 }
  0x24   :  { %359 = vmatpush3.msra.mxu1 %v169_v49 }
  0x8c   :  { %v32_v4 = vpop.xlane.xlu0 %31 }
  0x8d   :  { %v37_v5 = vmul.f32 0.03125, %v32_v4 }
  0x8f   :  { %v450_v6 = vsub.f32 %v438_v0, %v37_v5 }
  0x90   :  { %v35_v7 = vpop.xlane.xlu0 %34 }
  0x91   :  { %v38_v8 = vmul.f32 0.03125, %v35_v7  ;;  %v41_v9 = vmul.f32 %v450_v6, %v450_v6 }
  0x93   :  { %v455_v10 = vsub.f32 %v443_v1, %v38_v8  ;;  %v43_v11 = vsel %vm29_vm0, %v41_v9, 0.0 }
  0x94   :  { %44 = vadd.xlane.f32.xlu1 %v43_v11 }
  0x95   :  { %v42_v12 = vmul.f32 %v455_v10, %v455_v10 }
  0x97   :  { %v46_v13 = vsel %vm29_vm0, %v42_v12, 0.0 }
  0x98   :  { %47 = vadd.xlane.f32.xlu1 %v46_v13 }
 0x11d   :  { %v45_v30 = vpop.xlane.xlu1 %44 }
 0x11e   :  { %v49_v31 = vmul.f32 0.03125, %v45_v30 }
 0x120   :  { %v51_v32 = vadd.f32 1e-05, %v49_v31 }
 0x121   :  { %v48_v33 = vpop.xlane.xlu1 %47 }
 0x122   :  { %366 = vrsqrt.f32 %v51_v32  ;;  %v50_v34 = vmul.f32 0.03125, %v48_v33 }
 0x124   :  { %v52_v35 = vadd.f32 1e-05, %v50_v34 }
 0x126   :  { %368 = vrsqrt.f32 %v52_v35 }
 0x12f   :  { %v367_v36 = vpop.eup %366 }
 0x130   :  { %v55_v38 = vmul.f32 %v367_v36, %v450_v6 }
 0x132   :  { %v64_v40 = vmul.f32 %v287_v37, %v55_v38 }
 0x133   :  { %v369_v41 = vpop.eup %368 }
 0x134   :  { %v56_v42 = vmul.f32 %v369_v41, %v455_v10  ;;  %v73_v43 = vadd.f32 %v288_v39, %v64_v40 }
 0x136   :  { %v65_v44 = vmul.f32 %v287_v37, %v56_v42  ;;  %325 = vmatprep.mubr.msk.f32.mxu0 %vm29_vm0, %v73_v43 }
 0x138   :  { %v74_v45 = vadd.f32 %v288_v39, %v65_v44 }
 0x13a   :  { %326 = vmatmul.mubr.msk.f32.vlgmr.msra.gmra.mxu0 %vm29_vm0, %v74_v45 }
 0x1fa   :  { %v327_v51 = vpop.f32.mrf.mxu0 }
 0x1fb   :  { %v164_v52 = vadd.f32 %v327_v51, %v289_v50 }
 0x1fc   :  { %v158_v53 = vpop.f32.mrf.mxu0 }
 0x1fd   :  { %v159_v54 = vadd.f32 %v289_v50, %v158_v53  ;;  %v168_v56 = vmax.f32 %v164_v52, 0.0 }
 0x1ff   :  { %v167_v55 = vmax.f32 %v159_v54, 0.0 }
 0x201   :  { %360 = vmatprep.mubr.f32.mxu1 %v167_v55 }
 0x202   :  { %361 = vmatmul.mubr.f32.vlgmr.msra.gmra.mxu1 %v168_v56 }
 0x2c2   :  { %v362_v58 = vpop.f32.mrf.mxu1 }
 0x2c3   :  { %v264_v59 = vadd.f32 %v362_v58, %v292_v57 }
 0x2c4   :  { %v258_v60 = vpop.f32.mrf.mxu1 }
 0x2c5   :  { %v268_v61 = vadd.f32 %v264_v59, %v443_v1  ;;  %v259_v62 = vadd.f32 %v292_v57, %v258_v60 }
 0x2c7   :  { %270 = vst.msk [vmem:[#allocation2 + $0x8] sm:$0xff] %vm29_vm0, %v268_v61  ;;  %v267_v63 = vadd.f32 %v259_v62, %v438_v0 }
 0x2c9   :  { %269 = vst.msk [vmem:[#allocation2] sm:$0xff] %vm29_vm0, %v267_v63 }
 0x2ca   :  { %381 = shalt.err (!%p378_p4)
}
 0x2cb   :  { %s393_s6 = smov 128   ;;  %s394_s25 = smov 8  }
 0x2cc   :  { %282 = dma.vmem_to_hbm [thread:$0]  %s277_s24, 256, %s551_s7, [#allocation3], %s393_s6, %s393_s6, %s394_s25  }
 0x2cd   :  { %390 = dma.done.wait [#allocation3], 256  }
 0x2ce   :  { %391 = vsyncadd [#allocation3], 4294967040 }
 0x2cf   :  { %286 = vsyncpa [#allocation3], 1 }

</bundles_post_ra>
